<compile_context>
chip_gen: v5e
topology: v5e:2x2
jax: 0.10.0
libtpu: 0.0.40
codegen_flags: <defaults>
</compile_context>

<pallas_src>
import numpy as np
import jax
import jax.numpy as jnp
from jax.experimental import pallas as pl
from jax.experimental.pallas import tpu as pltpu


# ----------------------------------------------------------------------------
# Bilinear weights (PyTorch F.interpolate, mode='bilinear', align_corners=False).
# Each output row has exactly two nonzeros; edge rows clamp (i0 == i1).
# ----------------------------------------------------------------------------
def bilinear_matrix(out_size, in_size):
    i = np.arange(out_size, dtype=np.float64)
    src = (i + 0.5) * (in_size / out_size) - 0.5
    src = np.clip(src, 0.0, None)
    i0 = np.clip(np.floor(src).astype(np.int64), 0, in_size - 1)
    i1 = np.minimum(i0 + 1, in_size - 1)
    lam = (src - i0).astype(np.float32)
    W = np.zeros((out_size, in_size), dtype=np.float32)
    W[np.arange(out_size), i0] += 1.0 - lam
    W[np.arange(out_size), i1] += lam
    return W


# ----------------------------------------------------------------------------
# Kernel 1: fused conv (3x3, s=2, p=1) + ReLU + 1x1 classifier.
#   phases : 4 x (1, CIN, PHW) bf16   flat spatial, row stride WPP
#   w1     : (C1, 9*CIN) bf16         tap-major, channel-minor
#   b1     : (C1, 1) f32
#   w2     : (NCLSP, C1) bf16, b2 : (NCLSP, 1) f32
#   out    : (1, NCLSP, S) bf16       class-major, flat spatial (lane-dense store)
# ----------------------------------------------------------------------------
def _make_conv_head_kernel(wpp, s_flat):
    def conv_head_kernel(p00_ref, p01_ref, p10_ref, p11_ref,
                         w1_ref, b1_ref, w2_ref, b2_ref, o_ref):
        # Load each phase once: (CIN, PHW) bf16.
        pvals = (p00_ref[0], p01_ref[0], p10_ref[0], p11_ref[0])
        # The 9 conv taps are lane-shifted views of the 4 phases (shift = ro*WPP + co).
        taps = []
        for di in range(3):
            for dj in range(3):
                pv = pvals[(di % 2) * 2 + (dj % 2)]
                shift = (di // 2) * wpp + (dj // 2)
                taps.append(pv[:, shift:shift + s_flat])            # (CIN, S) bf16
        xcat = jnp.concatenate(taps, axis=0)                        # (9*CIN, S) bf16

        # One folded GEMM (K = 9*CIN) -> spatial-last hidden; everything lane-dense.
        hidden = jnp.dot(w1_ref[...], xcat,
                         preferred_element_type=jnp.float32)        # (C1, S) f32
        hidden = jnp.maximum(hidden + b1_ref[...], 0.0)             # bias + ReLU

        # 1x1 classifier: natural (NCLSP, C1) @ (C1, S) -> class-major, no transpose.
        logits = jnp.dot(w2_ref[...], hidden.astype(jnp.bfloat16),
                         preferred_element_type=jnp.float32) + b2_ref[...]
        o_ref[0] = logits.astype(o_ref.dtype)
    return conv_head_kernel


# ----------------------------------------------------------------------------
# Kernel 2: bilinear upsample of ONE class-plane per grid step.
#   out = Wh @ (feat @ WwT)   (align_corners=False weights precomputed outside)
# ----------------------------------------------------------------------------
def upsample_kernel(feat_ref, wh_ref, wwt_ref, o_ref):
    plane = feat_ref[0, 0]                                                    # (Ho, WPP) bf16
    wide = jnp.dot(plane, wwt_ref[...], preferred_element_type=jnp.float32)   # (Ho, W) f32
    o_ref[0, 0] = jnp.dot(wh_ref[...], wide.astype(jnp.bfloat16),
                          preferred_element_type=jnp.float32)                 # (H, W) f32


# ----------------------------------------------------------------------------
# Wrapper.
# ----------------------------------------------------------------------------
def simple_segmentation_model(x, params):
    """x: (N, CIN, H, W) float32 NCHW -> (N, NCLS, H, W) float32 NCHW."""
    N, CIN, H, W = x.shape
    w1, b1, w2, b2 = params["w1"], params["b1"], params["w2"], params["b2"]
    C1 = w1.shape[0]
    NCLS = w2.shape[0]
    Ho = (H - 1) // 2 + 1                   # conv output size for k=3, s=2, p=1
    Wo = (W - 1) // 2 + 1
    NCLSP = -(-NCLS // 8) * 8               # pad classes -> unmasked sublane stores
    WPP = Wo + 1                            # flat-spatial row stride (phase row width)
    HPH = Ho + 2                            # phase canvas rows (incl. halo + spare row)
    PHW = HPH * WPP
    S = Ho * WPP                            # GEMM free dim (1 garbage column per row,
                                            #   killed by a zero row in the width matrix)

    # ---- space-to-depth phases of the zero-padded input: channel-major, flat spatial,
    # bf16 (f32 accumulation in-kernel): ~1x input HBM traffic, no im2col in HBM.
    xpad = jnp.pad(x, ((0, 0), (0, 0), (1, 1), (1, 1)))
    phases = []
    for pr in (0, 1):
        for pc in (0, 1):
            ph = xpad[:, :, pr::2, pc::2]
            ph = jnp.pad(ph, ((0, 0), (0, 0),
                              (0, HPH - ph.shape[2]), (0, WPP - ph.shape[3])))
            phases.append(ph.reshape(N, CIN, PHW).astype(jnp.bfloat16))

    # ---- weights laid out for the folded GEMM and class-major classifier.
    w1_lhs = jnp.transpose(w1, (0, 2, 3, 1)).reshape(C1, 9 * CIN).astype(jnp.bfloat16)
    b1c = b1.reshape(C1, 1).astype(jnp.float32)
    w2m = jnp.pad(w2.reshape(NCLS, C1), ((0, NCLSP - NCLS), (0, 0))).astype(jnp.bfloat16)
    b2c = jnp.pad(b2.reshape(NCLS, 1), ((0, NCLSP - NCLS), (0, 0))).astype(jnp.float32)

    phase_spec = pl.BlockSpec((1, CIN, PHW), lambda n: (n, 0, 0))
    logits = pl.pallas_call(
        _make_conv_head_kernel(WPP, S),
        out_shape=jax.ShapeDtypeStruct((N, NCLSP, S), jnp.bfloat16),
        grid=(N,),
        in_specs=[phase_spec, phase_spec, phase_spec, phase_spec,
                  pl.BlockSpec((C1, 9 * CIN), lambda n: (0, 0)),
                  pl.BlockSpec((C1, 1), lambda n: (0, 0)),
                  pl.BlockSpec((NCLSP, C1), lambda n: (0, 0)),
                  pl.BlockSpec((NCLSP, 1), lambda n: (0, 0))],
        out_specs=pl.BlockSpec((1, NCLSP, S), lambda n: (n, 0, 0)),
        compiler_params=pltpu.CompilerParams(
            dimension_semantics=("parallel",),
            vmem_limit_bytes=64 * 1024 * 1024),
    )(*phases, w1_lhs, b1c, w2m, b2c)
    # TODO(synk): for large inputs on v7x (64 MiB VMEM, e.g. 1024x1024) add a halo-tiled
    # grid axis over Ho row-tiles (two row-shifted views per phase) so per-step phase and
    # hidden footprints stay bounded; whole-image-per-batch blocks are fine at these sizes.

    # Reinterpret flat-spatial logits as (Ho, WPP) planes for the upsample kernel.  This
    # reshape may cost one relayout pass over the (small, bf16) logits tensor; emitting
    # (Ho, WPP) directly from kernel 1 would need an in-kernel lane->sublane relayout of
    # the same data, so this is the cheap/safe place for it.
    feat = logits.reshape(N, NCLSP, Ho, WPP)

    # Bilinear matrices (align_corners=False); extra zero row in wwt kills the garbage
    # flat column, so `feat` needs no slicing.
    wh = jnp.asarray(bilinear_matrix(H, Ho)).astype(jnp.bfloat16)             # (H, Ho)
    wwt = jnp.pad(jnp.asarray(bilinear_matrix(W, Wo)).T,
                  ((0, WPP - Wo), (0, 0))).astype(jnp.bfloat16)               # (WPP, W)

    out = pl.pallas_call(
        upsample_kernel,
        out_shape=jax.ShapeDtypeStruct((N, NCLS, H, W), jnp.float32),
        grid=(N, NCLS),                     # padded class planes are never read/written
        in_specs=[pl.BlockSpec((1, 1, Ho, WPP), lambda n, c: (n, c, 0, 0)),
                  pl.BlockSpec((H, Ho), lambda n, c: (0, 0)),
                  pl.BlockSpec((WPP, W), lambda n, c: (0, 0))],
        out_specs=pl.BlockSpec((1, 1, H, W), lambda n, c: (n, c, 0, 0)),
        compiler_params=pltpu.CompilerParams(
            dimension_semantics=("parallel", "parallel"),
            vmem_limit_bytes=32 * 1024 * 1024),
    )(feat, wh, wwt)
    return out


# ----------------------------------------------------------------------------
# Pure-JAX (f32) reference for the sanity check.
# ----------------------------------------------------------------------------
def reference_model(x, params):
    w1, b1, w2, b2 = params["w1"], params["b1"], params["w2"], params["b2"]
    feat = jax.lax.conv_general_dilated(
        x, w1, window_strides=(2, 2), padding=((1, 1), (1, 1)),
        dimension_numbers=("NCHW", "OIHW", "NCHW"))
    feat = jnp.maximum(feat + b1[None, :, None, None], 0.0)
    logit = jax.lax.conv_general_dilated(
        feat, w2, window_strides=(1, 1), padding="VALID",
        dimension_numbers=("NCHW", "OIHW", "NCHW"))
    logit = logit + b2[None, :, None, None]
    H, W = x.shape[-2:]
    Ho, Wo = logit.shape[-2:]
    wh = jnp.asarray(bilinear_matrix(H, Ho))
    ww = jnp.asarray(bilinear_matrix(W, Wo))
    return jnp.einsum("ph,nchw,qw->ncpq", wh, logit, ww)


if __name__ == "__main__":
    N, CIN, H, W = 2, 4, 16, 16
    C1, NCLS = 8, 3

    key = jax.random.PRNGKey(0)
    kx, k1, k2, k3, k4 = jax.random.split(key, 5)
    x = jax.random.normal(kx, (N, CIN, H, W), dtype=jnp.float32)
    params = {
        "w1": jax.random.normal(k1, (C1, CIN, 3, 3), dtype=jnp.float32) * 0.1,
        "b1": jax.random.normal(k2, (C1,), dtype=jnp.float32) * 0.1,
        "w2": jax.random.normal(k3, (NCLS, C1, 1, 1), dtype=jnp.float32) * 0.1,
        "b2": jax.random.normal(k4, (NCLS,), dtype=jnp.float32) * 0.1,
    }

    out = jax.block_until_ready(simple_segmentation_model(x, params))
    assert out.shape == (N, NCLS, H, W), out.shape

    ref = jax.block_until_ready(reference_model(x, params))
    # bf16 matmul operands (f32 accumulation) -> relaxed tolerance vs the f32 reference.
    np.testing.assert_allclose(np.asarray(out), np.asarray(ref), rtol=2e-2, atol=2e-2)

    print("KERNEL_OK")
</pallas_src>

<mosaic_0001>
module attributes {stable_mosaic.version = 11 : i64} {
  func.func @conv_head_kernel(%arg0: i32, %arg1: memref<1x4x90xbf16, #tpu.memory_space<vmem>>, %arg2: memref<1x4x90xbf16, #tpu.memory_space<vmem>>, %arg3: memref<1x4x90xbf16, #tpu.memory_space<vmem>>, %arg4: memref<1x4x90xbf16, #tpu.memory_space<vmem>>, %arg5: memref<8x36xbf16, #tpu.memory_space<vmem>>, %arg6: memref<8x1xf32, #tpu.memory_space<vmem>>, %arg7: memref<8x8xbf16, #tpu.memory_space<vmem>>, %arg8: memref<8x1xf32, #tpu.memory_space<vmem>>, %arg9: memref<1x8x72xbf16, #tpu.memory_space<vmem>>) attributes {dimension_semantics = [#tpu.dimension_semantics<parallel>], iteration_bounds = array<i64: 2>, scalar_prefetch = 0 : i64, scratch_operands = 0 : i64, tpu.core_type = #tpu.core_type<tc>, window_params = [{transform_indices = @transform_0, window_bounds = array<i64: 1, 4, 90>}, {transform_indices = @transform_1, window_bounds = array<i64: 1, 4, 90>}, {transform_indices = @transform_2, window_bounds = array<i64: 1, 4, 90>}, {transform_indices = @transform_3, window_bounds = array<i64: 1, 4, 90>}, {pipeline_mode = #tpu.pipeline_mode<synchronous>, transform_indices = @transform_4, window_bounds = array<i64: 8, 36>}, {pipeline_mode = #tpu.pipeline_mode<synchronous>, transform_indices = @transform_5, window_bounds = array<i64: 8, 1>}, {pipeline_mode = #tpu.pipeline_mode<synchronous>, transform_indices = @transform_6, window_bounds = array<i64: 8, 8>}, {pipeline_mode = #tpu.pipeline_mode<synchronous>, transform_indices = @transform_7, window_bounds = array<i64: 8, 1>}, {transform_indices = @transform_8, window_bounds = array<i64: 1, 8, 72>}]} {
    %c0 = arith.constant 0 : index
    %c0_0 = arith.constant 0 : index
    %c0_1 = arith.constant 0 : index
    %0 = vector.load %arg1[%c0, %c0_0, %c0_1] : memref<1x4x90xbf16, #tpu.memory_space<vmem>>, vector<1x4x90xbf16>
    %1 = vector.shape_cast %0 : vector<1x4x90xbf16> to vector<4x90xbf16>
    %c0_2 = arith.constant 0 : index
    %c0_3 = arith.constant 0 : index
    %c0_4 = arith.constant 0 : index
    %2 = vector.load %arg2[%c0_2, %c0_3, %c0_4] : memref<1x4x90xbf16, #tpu.memory_space<vmem>>, vector<1x4x90xbf16>
    %3 = vector.shape_cast %2 : vector<1x4x90xbf16> to vector<4x90xbf16>
    %c0_5 = arith.constant 0 : index
    %c0_6 = arith.constant 0 : index
    %c0_7 = arith.constant 0 : index
    %4 = vector.load %arg3[%c0_5, %c0_6, %c0_7] : memref<1x4x90xbf16, #tpu.memory_space<vmem>>, vector<1x4x90xbf16>
    %5 = vector.shape_cast %4 : vector<1x4x90xbf16> to vector<4x90xbf16>
    %c0_8 = arith.constant 0 : index
    %c0_9 = arith.constant 0 : index
    %c0_10 = arith.constant 0 : index
    %6 = vector.load %arg4[%c0_8, %c0_9, %c0_10] : memref<1x4x90xbf16, #tpu.memory_space<vmem>>, vector<1x4x90xbf16>
    %7 = vector.shape_cast %6 : vector<1x4x90xbf16> to vector<4x90xbf16>
    %8 = vector.extract_strided_slice %1 {offsets = [0, 0], sizes = [4, 72], strides = [1, 1]} : vector<4x90xbf16> to vector<4x72xbf16>
    %9 = vector.extract_strided_slice %3 {offsets = [0, 0], sizes = [4, 72], strides = [1, 1]} : vector<4x90xbf16> to vector<4x72xbf16>
    %10 = vector.extract_strided_slice %1 {offsets = [0, 1], sizes = [4, 72], strides = [1, 1]} : vector<4x90xbf16> to vector<4x72xbf16>
    %11 = vector.extract_strided_slice %5 {offsets = [0, 0], sizes = [4, 72], strides = [1, 1]} : vector<4x90xbf16> to vector<4x72xbf16>
    %12 = vector.extract_strided_slice %7 {offsets = [0, 0], sizes = [4, 72], strides = [1, 1]} : vector<4x90xbf16> to vector<4x72xbf16>
    %13 = vector.extract_strided_slice %5 {offsets = [0, 1], sizes = [4, 72], strides = [1, 1]} : vector<4x90xbf16> to vector<4x72xbf16>
    %14 = vector.extract_strided_slice %1 {offsets = [0, 9], sizes = [4, 72], strides = [1, 1]} : vector<4x90xbf16> to vector<4x72xbf16>
    %15 = vector.extract_strided_slice %3 {offsets = [0, 9], sizes = [4, 72], strides = [1, 1]} : vector<4x90xbf16> to vector<4x72xbf16>
    %16 = vector.extract_strided_slice %1 {offsets = [0, 10], sizes = [4, 72], strides = [1, 1]} : vector<4x90xbf16> to vector<4x72xbf16>
    %17 = tpu.concatenate %8, %9, %10, %11, %12, %13, %14, %15, %16 in 0 : vector<4x72xbf16>, vector<4x72xbf16>, vector<4x72xbf16>, vector<4x72xbf16>, vector<4x72xbf16>, vector<4x72xbf16>, vector<4x72xbf16>, vector<4x72xbf16>, vector<4x72xbf16> -> vector<36x72xbf16>
    %c0_11 = arith.constant 0 : index
    %c0_12 = arith.constant 0 : index
    %18 = vector.load %arg5[%c0_11, %c0_12] : memref<8x36xbf16, #tpu.memory_space<vmem>>, vector<8x36xbf16>
    %cst = arith.constant dense<0.000000e+00> : vector<8x72xf32>
    %19 = tpu.matmul %18, %17, %cst {dimension_numbers = #tpu.dot_dimension_numbers<[1], [0], [0], [1], [0, 0, 1, 1], [], []>} : vector<8x36xbf16>, vector<36x72xbf16>, vector<8x72xf32> -> vector<8x72xf32>
    %c0_13 = arith.constant 0 : index
    %c0_14 = arith.constant 0 : index
    %20 = vector.load %arg6[%c0_13, %c0_14] : memref<8x1xf32, #tpu.memory_space<vmem>>, vector<8x1xf32>
    %21 = vector.broadcast %20 : vector<8x1xf32> to vector<8x72xf32>
    %22 = arith.addf %19, %21 : vector<8x72xf32>
    %cst_15 = arith.constant 0.000000e+00 : f32
    %23 = vector.broadcast %cst_15 : f32 to vector<8x72xf32>
    %24 = arith.maximumf %22, %23 : vector<8x72xf32>
    %c0_16 = arith.constant 0 : index
    %c0_17 = arith.constant 0 : index
    %25 = vector.load %arg7[%c0_16, %c0_17] : memref<8x8xbf16, #tpu.memory_space<vmem>>, vector<8x8xbf16>
    %26 = arith.truncf %24 : vector<8x72xf32> to vector<8x72xbf16>
    %cst_18 = arith.constant dense<0.000000e+00> : vector<8x72xf32>
    %27 = tpu.matmul %25, %26, %cst_18 {dimension_numbers = #tpu.dot_dimension_numbers<[1], [0], [0], [1], [0, 0, 1, 1], [], []>} : vector<8x8xbf16>, vector<8x72xbf16>, vector<8x72xf32> -> vector<8x72xf32>
    %c0_19 = arith.constant 0 : index
    %c0_20 = arith.constant 0 : index
    %28 = vector.load %arg8[%c0_19, %c0_20] : memref<8x1xf32, #tpu.memory_space<vmem>>, vector<8x1xf32>
    %29 = vector.broadcast %28 : vector<8x1xf32> to vector<8x72xf32>
    %30 = arith.addf %27, %29 : vector<8x72xf32>
    %31 = arith.truncf %30 : vector<8x72xf32> to vector<8x72xbf16>
    %c0_21 = arith.constant 0 : index
    %c0_22 = arith.constant 0 : index
    %c0_23 = arith.constant 0 : index
    %32 = vector.load %arg9[%c0_21, %c0_22, %c0_23] : memref<1x8x72xbf16, #tpu.memory_space<vmem>>, vector<1x8x72xbf16>
    %33 = vector.shape_cast %32 : vector<1x8x72xbf16> to vector<8x72xbf16>
    %34 = vector.shape_cast %31 : vector<8x72xbf16> to vector<1x8x72xbf16>
    tpu.vector_store %arg9[%c0_21, %c0_22, %c0_23], %34 {strides = array<i32>} : memref<1x8x72xbf16, #tpu.memory_space<vmem>>, vector<1x8x72xbf16>,
    return
  }
  func.func @transform_0(%arg0: i32) -> (i32, i32, i32) {
    %c0_i32 = arith.constant 0 : i32
    %c0_i32_0 = arith.constant 0 : i32
    %c0_i32_1 = arith.constant 0 : i32
    return %arg0, %c0_i32, %c0_i32_0 : i32, i32, i32
  }
  func.func @transform_1(%arg0: i32) -> (i32, i32, i32) {
    %c0_i32 = arith.constant 0 : i32
    %c0_i32_0 = arith.constant 0 : i32
    %c0_i32_1 = arith.constant 0 : i32
    return %arg0, %c0_i32, %c0_i32_0 : i32, i32, i32
  }
  func.func @transform_2(%arg0: i32) -> (i32, i32, i32) {
    %c0_i32 = arith.constant 0 : i32
    %c0_i32_0 = arith.constant 0 : i32
    %c0_i32_1 = arith.constant 0 : i32
    return %arg0, %c0_i32, %c0_i32_0 : i32, i32, i32
  }
  func.func @transform_3(%arg0: i32) -> (i32, i32, i32) {
    %c0_i32 = arith.constant 0 : i32
    %c0_i32_0 = arith.constant 0 : i32
    %c0_i32_1 = arith.constant 0 : i32
    return %arg0, %c0_i32, %c0_i32_0 : i32, i32, i32
  }
  func.func @transform_4(%arg0: i32) -> (i32, i32) {
    %c0_i32 = arith.constant 0 : i32
    %c0_i32_0 = arith.constant 0 : i32
    %c0_i32_1 = arith.constant 0 : i32
    return %c0_i32, %c0_i32_0 : i32, i32
  }
  func.func @transform_5(%arg0: i32) -> (i32, i32) {
    %c0_i32 = arith.constant 0 : i32
    %c0_i32_0 = arith.constant 0 : i32
    %c0_i32_1 = arith.constant 0 : i32
    return %c0_i32, %c0_i32_0 : i32, i32
  }
  func.func @transform_6(%arg0: i32) -> (i32, i32) {
    %c0_i32 = arith.constant 0 : i32
    %c0_i32_0 = arith.constant 0 : i32
    %c0_i32_1 = arith.constant 0 : i32
    return %c0_i32, %c0_i32_0 : i32, i32
  }
  func.func @transform_7(%arg0: i32) -> (i32, i32) {
    %c0_i32 = arith.constant 0 : i32
    %c0_i32_0 = arith.constant 0 : i32
    %c0_i32_1 = arith.constant 0 : i32
    return %c0_i32, %c0_i32_0 : i32, i32
  }
  func.func @transform_8(%arg0: i32) -> (i32, i32, i32) {
    %c0_i32 = arith.constant 0 : i32
    %c0_i32_0 = arith.constant 0 : i32
    %c0_i32_1 = arith.constant 0 : i32
    return %arg0, %c0_i32, %c0_i32_0 : i32, i32, i32
  }
}

</mosaic_0001>

<bundles_post_ra>
// kernel: tpu_custom_call.1
= control target key start
LH: loop header
LB: loop body
LE: loop exit
PB: predicated region body
PF: predicated region fallthrough
CT: control target
= control target key end

     0   :  { %13 = vsyncpa [#allocation3], 0  ;;  %s945_s0 = inlined_call_operand.vmem [shape: bf16[2,4,90], index: 0, kind: input, shape index: {}]   ;;  %s946_s1 = inlined_call_operand.vmem [shape: bf16[2,4,90], index: 1, kind: input, shape index: {}]   ;;  %s947_s2 = inlined_call_operand.vmem [shape: bf16[2,4,90], index: 2, kind: input, shape index: {}]   ;;  %s948_s3 = inlined_call_operand.vmem [shape: bf16[2,4,90], index: 3, kind: input, shape index: {}]   ;;  %s949_s4 = inlined_call_operand.hbm [shape: bf16[8,36], index: 4, kind: input, shape index: {}]   ;;  %s950_s5 = inlined_call_operand.vmem [shape: f32[8,1], index: 5, kind: input, shape index: {}]   ;;  %s951_s6 = inlined_call_operand.vmem [shape: bf16[8,8], index: 6, kind: input, shape index: {}]   ;;  %s952_s7 = inlined_call_operand.vmem [shape: f32[8,1], index: 7, kind: input, shape index: {}]   ;;  %s953_s8 = inlined_call_operand.hbm [shape: bf16[2,8,72], index: 8, kind: output, shape index: {}]  }
   0x1   :  { %14 = vsyncpa [#allocation4], 0 }
   0x2   :  { %16 = vsyncpa [#allocation4 + $0x1], 0  ;;  %s829_s27 = smov 0   ;;  %s831_s28 = smov 0  }
   0x3   :  { %s833_s29 = smov 0   ;;  %s835_s30 = smov 0  }
   0x4 LB: > { %s850_s9 = sadd.s32 4294967295, %s777_s30   ;;  %s608_s10 = sadd.s32 4294967294, %s777_s30   ;;  %s777_s30 = sphi %s835_s30, %s959_s30   ;;  %s773_s29 = sphi %s833_s29, %s958_s29   ;;  %s769_s28 = sphi %s831_s28, %s957_s28   ;;  %s765_s27 = sphi %s829_s27, %s956_s27  }
   0x5   : > { %s854_s11 = sadd.s32 1, %s777_s30   ;;  %s217_s12 = sadd.s32 1, %s773_s29 }
   0x6   : > { %s214_s13 = ssub.s32 %s777_s30, %s854_s11  ;;  %p227_p0 = scmp.ne.s32.totalorder %s773_s29, %s769_s28 }
   0x7   : > { %p215_p1 = scmp.eq.s32.totalorder %s214_s13, 0  ;;  %p228_p2 = scmp.eq.s32.totalorder %s850_s9, 1 }
   0x8   : > { %p233_p3 = scmp.ne.s32.totalorder %s769_s28, %s765_s27  ;;  %p234_p4 = scmp.eq.s32.totalorder %s608_s10, 1 }
   0x9   : > { %s865_s14 = scalar_select %p215_p1, %s773_s29, %s217_s12  }
   0xa   : > { %p867_p5 = por %p228_p2, %p227_p0  ;;  %p871_p6 = por %p234_p4, %p233_p3 }
   0xb   : > { %p609_p7 = scmp.ge.s32.totalorder %s777_s30, 1  ;;  %p241_p8 = scmp.lt.s32.totalorder %s777_s30, 3 }
   0xc   : > { %p639_p9 = scmp.eq.s32.totalorder %s850_s9, 0  ;;  %s253_s19 = sshll.u32 %s949_s4, 4  ;;  %s254_s19 = int_to_ptr.hbm [resolvable:$true] %s253_s19 }
   0xd   : > { %p242_p10 = pnand %p609_p7, %p241_p8  ;;  %s779_s20 = smov [#allocation2]  }
   0xe   : > { %s255_s21 = sshll.u32 %s779_s20, 4  ;;  %s256_s21 = int_to_ptr.vmem [resolvable:$true] %s255_s21 }
   0xf   : > { %p631_p11 = pneg %p242_p10  ;;  %305 = sbr.rel (%p242_p10) target bundleno = 487 (0x1e7), region = 52 }
  0x11   : > { %p632_p12 = pnand %p639_p9, %p631_p11 }
  0x13   : > { %634 = dma.hbm_to_vmem [thread:$0]  (!%p632_p12), %s254_s19, 64, %s256_s21, [#allocation3]  }
  0x14   : > { %756 = dma.done.wait (%p639_p9), [#allocation3], 64  }
  0x15   : > { %758 = vsyncadd (%p639_p9), [#allocation3], 4294967232  ;;  %p351_p13 = scmp.lt.s32.totalorder %s850_s9, 1  ;;  %s780_s20 = smov 127   ;;  %v427_v10 = vld [vmem:[%s950_s5] sm:$0xff]  ;;  %v783_v11 = vmov 0  }
  0x16   : > { %s781_s21 = smov 119   ;;  %679 = vset.pattern.permute.xlu2 %v783_v11  ;;  %680 = vset.pattern.permute.xlu0 %v783_v11  ;;  %vm410_vm0 = vcmask 1041408   ;;  %vm412_vm1 = vcmask 1043456   ;;  %vm415_vm2 = vcmask 1045504   ;;  %v426_v25 = vld [vmem:[#allocation2] sm:$0xf] }
  0x17   : > { %s352_s22 = scalar_select %p351_p13, %s850_s9, 1  ;;  %vm433_vm3 = vcmask 293888   ;;  %v456_v26 = vld [vmem:[%s952_s7] sm:$0xff]  ;;  %vm462_vm4 = vcmask 64512   ;;  %vm483_vm5 = vcmask 584704  }
  0x18   : > { %v454_v34 = vld [vmem:[%s951_s6] sm:$0xf] }
  0x19   : > { %s883_s23 = sshll.u32 %s352_s22, 1  ;;  %s782_s22 = smov 118  }
  0x1a   : > { %s358_s26 = scalar_lea.vmem %s946_s1, %s883_s23  ;;  %s354_s13 = scalar_lea.vmem %s945_s0, %s883_s23 }
  0x1b   : > { %v369_v0 = vld [vmem:[%s358_s26] sm:$0x3]  ;;  %s362_s19 = scalar_lea.vmem %s947_s2, %s883_s23  ;;  %s366_s12 = scalar_lea.vmem %s948_s3, %s883_s23 }
  0x1c   : > { %374 = vst [vmem:[#allocation1 + $0x1] ss:$4 sm:$0xff] %v369_v0  ;;  %v368_v1 = vld [vmem:[%s354_s13] sm:$0x3] }
  0x1d   : > { %v370_v3 = vld [vmem:[%s362_s19] sm:$0x3]  ;;  %s348_s19 = sand.u32 1, %s769_s28  }
  0x1e   : > { %v371_v15 = vld [vmem:[%s366_s12] sm:$0x3]  ;;  %s486_s23 = scalar_lea.sflag [#allocation4], %s348_s19 }
  0x23   : > { %v375_v2 = vld.sshfl [vmem:[#allocation1] sm:$0xff pattern:$0x73625140] }
  0x24   : > { %378 = vst [vmem:[#allocation1 + $0x2] ss:$4 sm:$0xff] %v368_v1  ;;  %v411_v16 = vsel %vm410_vm0, %v368_v1, %v375_v2 }
  0x2b   : > { %v379_v4 = vld.sshfl [vmem:[#allocation1] sm:$0xff pattern:$0x73625140] }
  0x2c   : > { %385 = vst [vmem:[#allocation1 + $0x3] ss:$4 sm:$0xff] %v370_v3  ;;  %381 = vrot.lane.b32.xlu2 %v379_v4, %s780_s20 }
  0x33   : > { %v386_v5 = vld.sshfl [vmem:[#allocation1] sm:$0xff pattern:$0x73625140] }
  0x34   : > { %388 = vst [vmem:[#allocation1 + $0x1] ss:$4 sm:$0xff] %v370_v3  ;;  %430 = vperm.xlu2 %679, %v427_v10  }
  0x3b   : > { %v389_v6 = vld.sshfl [vmem:[#allocation1] sm:$0xff pattern:$0x73625140] }
  0x3c   : > { %394 = vst [vmem:[#allocation1 + $0x2] ss:$4 sm:$0xff] %v368_v1 }
  0x43   : > { %v395_v7 = vld.sshfl [vmem:[#allocation1] sm:$0xff pattern:$0x73625140] }
  0x44   : > { %400 = vst [vmem:[#allocation1 + $0x3] ss:$4 sm:$0xff] %v369_v0  ;;  %397 = vrot.lane.b32.xlu1 %v395_v7, %s781_s21 }
  0x4b   : > { %v401_v8 = vld.sshfl [vmem:[#allocation1] sm:$0xff pattern:$0x73625140] }
  0x4c   : > { %405 = vst [vmem:[#allocation1] ss:$4 sm:$0xff] %v368_v1  ;;  %403 = vrot.lane.b32.xlu1 %v401_v8, %s781_s21  ;;  %s622_s21 = sshll.u32 %s850_s9, 2 }
  0x4d   : > { %s496_s25 = scalar_lea.hbm %s953_s8, %s622_s21 }
  0x4e   : > { %s500_s12 = sshll.u32 %s496_s25, 4  ;;  %s501_s12 = int_to_ptr.hbm [resolvable:$true] %s500_s12 }
  0x4f   : > { %s725_s13 = sshra.s32 %s501_s12, 4  ;;  %s726_s13 = int_to_ptr.hbm [resolvable:$true] %s725_s13 }
  0x50   : > { %s727_s9 = scalar_lea.hbm %s726_s13, 4  ;;  %p732_p3 = scmp.lt.s32.totalorder %s726_s13, %s953_s8 }
  0x51   : > { %p728_p0 = scmp.ne.s32.totalorder %s726_s13, %s727_s9 }
  0x53   : > { %v406_v9 = vld.sshfl [vmem:[#allocation1] sm:$0xff pattern:$0x73625140]  ;;  %p729_p1 = pnand %p728_p0, %p867_p5 }
  0x54   : > { %408 = vrot.lane.b32.xlu0 %v406_v9, %s782_s22 }
  0x55   : > { %p730_p2 = pneg %p729_p1 }
  0x5c   : > { %391 = vrot.lane.b32.xlu0 %v389_v6, %s780_s20  ;;  %s614_s20 = sshll.u32 %s348_s19, 2 }
  0x5d   : > { %s350_s26 = scalar_lea.vmem [#allocation5], %s614_s20  ;;  %s731_s20 = scalar_lea.hbm %s953_s8, 8 }
  0x5e   : > { %s498_s10 = sshll.u32 %s350_s26, 4  ;;  %p733_p4 = scmp.lt.s32.totalorder %s731_s20, %s727_s9  ;;  %s499_s10 = int_to_ptr.vmem [resolvable:$true] %s498_s10 }
  0x60   : > { %p734_p7 = por %p733_p4, %p732_p3 }
  0x62   : > { %p735_p8 = pnand %p734_p7, %p730_p2 }
  0x64   : > { %459 = vperm.xlu0 %680, %v456_v26  }
  0x86   : > { %v382_v17 = vpop.permute.xlu2 %381 }
  0x87   : > { %v414_v22 = vsel %vm412_vm1, %v411_v16, %v382_v17 }
  0x88   : > { %v416_v24 = vsel %vm415_vm2, %v414_v22, %v386_v5 }
  0x8e   : > { %v431_v27 = vpop.permute.xlu2 %430 }
  0xb6   : > { %v398_v12 = vpop.permute.xlu1 %397 }
  0xbe   : > { %v404_v19 = vpop.permute.xlu1 %403 }
  0xc6   : > { %v409_v13 = vpop.permute.xlu0 %408 }
  0xc7   : > { %v438_v14 = vsel %vm410_vm0, %v409_v13, 0 }
  0xc8   : > { %445 = vmatpush.bf16.msra.mxu0 %v438_v14 }
  0xce   : > { %v392_v18 = vpop.permute.xlu0 %391 }
  0xcf   : > { %v420_v20 = vsel %vm410_vm0, %v371_v15, %v392_v18 }
  0xd0   : > { %v422_v21 = vsel %vm412_vm1, %v420_v20, %v398_v12 }
  0xd1   : > { %v424_v23 = vsel %vm415_vm2, %v422_v21, %v404_v19 }
  0xd2   : > { %446 = vmatpush.bf16.msra.mxu0 %v424_v23 }
  0xd6   : > { %447 = vmatpush.bf16.msra.mxu0 %v416_v24  ;;  %v460_v35 = vpop.permute.xlu0 %459 }
  0xd9   : > { %619 = vmatmul.msk.bf16.vlgmr.msra.gmra.mxu0 %vm433_vm3, %v426_v25 }
 0x156   : > { %v449_v28 = vpop.f32.mrf.mxu0 }
 0x157   : > { %v450_v29 = vadd.f32 %v449_v28, %v431_v27 }
 0x159   : > { %v453_v30 = vmax.f32 %v450_v29, 0.0 }
 0x15b   : > { %v455_v31 = vpack.c.bf16 %v453_v30, %v453_v30 }
 0x15d   : > { %v467_v32 = vsel %vm412_vm1, %v455_v31, 0 }
 0x15e   : > { %v451_v33 = vpop.f32.mrf.mxu0  ;;  %476 = vmatpush.bf16.msra.mxu1 %v467_v32 }
 0x161   : > { %620 = vmatmul.msk.bf16.vlgmr.msra.gmra.mxu1 %vm462_vm4, %v454_v34 }
 0x1de   : > { %v478_v36 = vpop.f32.mrf.mxu1 }
 0x1df   : > { %v479_v37 = vadd.f32 %v478_v36, %v460_v35 }
 0x1e1   : > { %v482_v38 = vpack.c.bf16 %v479_v37, %v479_v37 }
 0x1e3   : > { %484 = vst.msk [vmem:[%s350_s26] sm:$0xf] %vm483_vm5, %v482_v38 }
 0x1e4   : > { %738 = shalt.err (!%p735_p8)
}
 0x1e5   : > { %629 = dma.vmem_to_hbm [thread:$0]  (%p867_p5), %s499_s10, 64, %s501_s12, %s486_s23  }
 0x1e6   : > { %v480_v39 = vpop.f32.mrf.mxu1 }
 0x1e7 PF: > { %p641_p9 = scmp.ge.s32.totalorder %s777_s30, 2  ;;  %s512_s19 = sand.u32 1, %s765_s27  }
 0x1e8   : > { %s513_s24 = scalar_lea.sflag [#allocation4], %s512_s19 }
 0x1e9   : > { %p636_p10 = pnand %p641_p9, %p871_p6 }
 0x1eb   : > { %p637_p11 = pneg %p636_p10 }
 0x1ed   : > { %760 = dma.done.wait (%p637_p11), %s513_s24, 64  }
 0x1ee   : > { %762 = vsyncadd (%p637_p11), %s513_s24, 4294967232  ;;  %p19_p12 = scmp.ge.s32.totalorder %s854_s11, 4   ;;  %s956_s27 = smov %s769_s28 }
 0x1ef   : > { %s957_s28 = smov %s773_s29  ;;  %s958_s29 = smov %s865_s14 }
 0x1f0   : > { %s959_s30 = smov %s854_s11  ;;  %21 = sbr.rel (!%p19_p12) target bundleno = 4 (0x4), region = 107 }
 0x1f5   :  { %519 = vsyncpa [#allocation3], 1 }
 0x1f6   :  { %521 = vsyncpa [#allocation3 + $0x1], 1 }
 0x1f7   :  { %522 = vsyncpa [#allocation4], 1 }
 0x1f8   :  { %524 = vsyncpa [#allocation4 + $0x1], 1 }

</bundles_post_ra>
